<compile_context>
chip_gen: v6e
topology: v6e:2x2x1
jax: 0.10.0
libtpu: 0.0.40
codegen_flags: <defaults>
</compile_context>

<pallas_src>
import functools

import numpy as np
import jax
import jax.numpy as jnp
from jax.experimental import pallas as pl
from jax.experimental.pallas import tpu as pltpu

WIN = 11          # SSIM gaussian window size
SIGMA = 1.5       # SSIM gaussian sigma
K1, K2 = 0.01, 0.03
DATA_RANGE = 1.0


# ----------------------------------------------------------------------------
# Host-side (deterministic) filter-matrix construction.
# ----------------------------------------------------------------------------
def _gaussian_1d(size=WIN, sigma=SIGMA):
    x = np.arange(size, dtype=np.float64) - size // 2
    g = np.exp(-(x ** 2) / (2.0 * sigma ** 2))
    g /= g.sum()
    return g.astype(np.float32)


def _round_up(n, m):
    return ((n + m - 1) // m) * m


def _fh_blockdiag(h, hout, hpad):
    """Block-diagonal H-filter for the 5 stacked gfilt inputs.

    Shape (5*hpad, 5*h); block b holds Fh (hout x h) in rows
    [b*hpad, b*hpad+hout) (sublane-aligned start), cols [b*h, (b+1)*h).
    """
    g = _gaussian_1d()
    fh = np.zeros((hout, h), np.float32)
    for o in range(hout):
        fh[o, o:o + WIN] = g
    big = np.zeros((5 * hpad, 5 * h), np.float32)
    for b in range(5):
        big[b * hpad:b * hpad + hout, b * h:(b + 1) * h] = fh
    return big


def _fwt_blockdiag(w, wout, tc):
    """Block-diagonal transposed W-filter over TC lane-packed planes.

    Shape (tc*w, tc*wout); plane p holds Fw^T (w x wout) in rows
    [p*w, (p+1)*w), cols [p*wout, (p+1)*wout).
    """
    g = _gaussian_1d()
    fwt = np.zeros((w, wout), np.float32)
    for o in range(wout):
        fwt[o:o + WIN, o] = g
    big = np.zeros((tc * w, tc * wout), np.float32)
    for p in range(tc):
        big[p * w:(p + 1) * w, p * wout:(p + 1) * wout] = fwt
    return big


def _choose_planes_per_block(n, h, w, itemsize):
    """TC = planes per grid step: target ~512 packed lanes, cap VMEM use."""
    hout, wout = h - WIN + 1, w - WIN + 1
    hpad = _round_up(hout, 8)
    tc = max(1, min(n, -(-512 // w)))

    def vmem_est(t):
        tcw, tcwo = t * w, t * wout
        return (2 * 2 * h * tcw * itemsize                 # double-buffered x1, x2
                + 4 * (5 * hpad * 5 * h + tcw * tcwo)      # filter matrices
                + 4 * (5 * h * tcw + 5 * hpad * tcw + 8 * hpad * tcwo))  # temps

    while tc > 1 and vmem_est(tc) > (12 << 20):
        tc -= 1
    return tc


# ----------------------------------------------------------------------------
# Fused kernel: SSIM partial sums (per plane-block) + identity loss.
# ----------------------------------------------------------------------------
def _fused_kernel(x1_ref, x2_ref, fh_ref, fwt_ref, e1_ref, e2_ref, out_ref,
                  *, hout, hpad):
    # ---- SSIM over TC lane-packed planes ------------------------------------
    x1 = x1_ref[...].astype(jnp.float32)        # (H, TC*W)
    x2 = x2_ref[...].astype(jnp.float32)        # (H, TC*W)

    # 5 gaussian-filter inputs stacked along sublanes -> one MXU push each stage
    cat = jnp.concatenate([x1, x2, x1 * x1, x2 * x2, x1 * x2], axis=0)  # (5H, TC*W)

    t = jnp.dot(fh_ref[...], cat, preferred_element_type=jnp.float32)   # (5*hpad, TC*W)
    g = jnp.dot(t, fwt_ref[...], preferred_element_type=jnp.float32)    # (5*hpad, TC*Wout)

    mu1 = g[0 * hpad:0 * hpad + hout, :]
    mu2 = g[1 * hpad:1 * hpad + hout, :]
    e11 = g[2 * hpad:2 * hpad + hout, :]
    e22 = g[3 * hpad:3 * hpad + hout, :]
    e12 = g[4 * hpad:4 * hpad + hout, :]

    mu1_sq = mu1 * mu1
    mu2_sq = mu2 * mu2
    mu12 = mu1 * mu2
    sigma1_sq = e11 - mu1_sq
    sigma2_sq = e22 - mu2_sq
    sigma12 = e12 - mu12

    c1 = (K1 * DATA_RANGE) ** 2
    c2 = (K2 * DATA_RANGE) ** 2
    num = (2.0 * mu12 + c1) * (2.0 * sigma12 + c2)
    den = (mu1_sq + mu2_sq + c1) * (sigma1_sq + sigma2_sq + c2)
    ssim_partial = jnp.sum(num / den)           # one reduce per block of planes

    # ---- identity loss (fused tail; trivial 512-element dot) ----------------
    e1 = e1_ref[...].astype(jnp.float32)        # (1, D)
    e2 = e2_ref[...].astype(jnp.float32)        # (1, D)
    eps = 1e-8                                  # torch nn.CosineSimilarity default
    dot = jnp.sum(e1 * e2)
    n1 = jnp.sqrt(jnp.sum(e1 * e1))
    n2 = jnp.sqrt(jnp.sum(e2 * e2))
    sim = dot / jnp.maximum(n1 * n2, eps)       # clamp the product (torch semantics)
    id_loss = 1.0 - (sim + 1.0) * 0.5
    id_loss = (id_loss * id_loss) * 10.0

    # ---- lane-dense (1, 128) output row: [ssim_sum, identity, 0, ...] -------
    lane = jax.lax.broadcasted_iota(jnp.int32, (1, 128), 1)
    out_ref[...] = jnp.where(lane == 0, ssim_partial,
                             jnp.where(lane == 1, id_loss, 0.0))


# ----------------------------------------------------------------------------
# Wrapper: layout plumbing + single pallas_call + tiny JAX-side reduction.
# ----------------------------------------------------------------------------
def style_transfer_losses(output_image, target_content, out_emb, tgt_emb):
    B, C, H, W = output_image.shape
    N = B * C
    Hout, Wout = H - WIN + 1, W - WIN + 1
    assert Hout > 0 and Wout > 0, "image smaller than SSIM window"
    Hpad = _round_up(Hout, 8)

    tc = _choose_planes_per_block(N, H, W, jnp.dtype(output_image.dtype).itemsize)
    num_blocks = -(-N // tc)
    Npad = num_blocks * tc

    def arrange(img):
        # NCHW -> (H, Npad*W): planes packed along the lane axis (zero-pad planes).
        x = img.reshape(N, H, W)
        if Npad != N:
            x = jnp.pad(x, ((0, Npad - N), (0, 0), (0, 0)))
        return jnp.transpose(x, (1, 0, 2)).reshape(H, Npad * W)

    x1 = arrange(output_image)
    x2 = arrange(target_content)

    fh = jnp.asarray(_fh_blockdiag(H, Hout, Hpad))        # (5*Hpad, 5*H)
    fwt = jnp.asarray(_fwt_blockdiag(W, Wout, tc))        # (tc*W, tc*Wout)

    D = out_emb.shape[-1]
    e1 = out_emb.reshape(1, D)
    e2 = tgt_emb.reshape(1, D)

    kernel = functools.partial(_fused_kernel, hout=Hout, hpad=Hpad)

    out = pl.pallas_call(
        kernel,
        out_shape=jax.ShapeDtypeStruct((num_blocks, 128), jnp.float32),
        grid_spec=pltpu.PrefetchScalarGridSpec(
            num_scalar_prefetch=0,
            grid=(num_blocks,),
            in_specs=[
                pl.BlockSpec((H, tc * W), lambda i: (0, i)),       # x1 planes
                pl.BlockSpec((H, tc * W), lambda i: (0, i)),       # x2 planes
                pl.BlockSpec((5 * Hpad, 5 * H), lambda i: (0, 0)),  # H filter
                pl.BlockSpec((tc * W, tc * Wout), lambda i: (0, 0)),  # W filter^T
                pl.BlockSpec((1, D), lambda i: (0, 0)),            # embedding 1
                pl.BlockSpec((1, D), lambda i: (0, 0)),            # embedding 2
            ],
            out_specs=pl.BlockSpec((1, 128), lambda i: (i, 0)),
        ),
        compiler_params=pltpu.CompilerParams(
            dimension_semantics=("parallel",),          # plane-block axis is parallel
            vmem_limit_bytes=64 * 1024 * 1024,          # explicit budget (v5e 16MiB default)
        ),
    )(x1, x2, fh, fwt, e1, e2)

    # Padded (all-zero) planes contribute exactly 1.0 per pixel; subtract them.
    n_pad = Npad - N
    ssim_sum = jnp.sum(out[:, 0]) - jnp.float32(n_pad * Hout * Wout)
    mssim = ssim_sum / jnp.float32(N * Hout * Wout)
    content_loss = 1.0 - mssim
    identity_loss = out[0, 1]
    return content_loss, identity_loss


# ----------------------------------------------------------------------------
# StyleTransferLoss.forward equivalent.
# ----------------------------------------------------------------------------
def style_transfer_loss_forward(output_image, target_content,
                                target_face_latent, source_face_latent,
                                output_embedding, target_embedding):
    # content_loss = 1 - ssim(output_image, target_content, data_range=1.0)
    # identity_loss path: embeddings supplied in lieu of FaceAnalysis extraction.
    content_loss, identity_loss = style_transfer_losses(
        output_image, target_content, output_embedding, target_embedding)
    euclidean_distance = None  # never computed in the reference forward
    return content_loss, identity_loss, euclidean_distance


if __name__ == "__main__":
    key = jax.random.PRNGKey(0)
    k1, k2, k3, k4 = jax.random.split(key, 4)

    B, C, H, W = 2, 3, 16, 16
    D = 512  # insightface embedding dimension

    output_image = jax.random.uniform(k1, (B, C, H, W), jnp.float32)
    target_content = jax.random.uniform(k2, (B, C, H, W), jnp.float32)
    output_embedding = jax.random.normal(k3, (D,), jnp.float32)
    target_embedding = jax.random.normal(k4, (D,), jnp.float32)

    # latents passed through the forward signature (unused, like in PyTorch)
    target_face_latent = target_embedding
    source_face_latent = output_embedding

    content_loss, identity_loss, euclid = style_transfer_loss_forward(
        output_image, target_content, target_face_latent, source_face_latent,
        output_embedding, target_embedding)

    jax.block_until_ready((content_loss, identity_loss))
    print("KERNEL_OK")
</pallas_src>

<mosaic_0001>
module attributes {stable_mosaic.version = 11 : i64} {
  func.func @_fused_kernel(%arg0: i32, %arg1: memref<16x96xf32, #tpu.memory_space<vmem>>, %arg2: memref<16x96xf32, #tpu.memory_space<vmem>>, %arg3: memref<40x80xf32, #tpu.memory_space<vmem>>, %arg4: memref<96x36xf32, #tpu.memory_space<vmem>>, %arg5: memref<1x512xf32, #tpu.memory_space<vmem>>, %arg6: memref<1x512xf32, #tpu.memory_space<vmem>>, %arg7: memref<1x128xf32, #tpu.memory_space<vmem>>) attributes {dimension_semantics = [#tpu.dimension_semantics<parallel>], iteration_bounds = array<i64: 1>, scalar_prefetch = 0 : i64, scratch_operands = 0 : i64, tpu.core_type = #tpu.core_type<tc>, window_params = [{transform_indices = @transform_0, window_bounds = array<i64: 16, 96>}, {transform_indices = @transform_1, window_bounds = array<i64: 16, 96>}, {pipeline_mode = #tpu.pipeline_mode<synchronous>, transform_indices = @transform_2, window_bounds = array<i64: 40, 80>}, {pipeline_mode = #tpu.pipeline_mode<synchronous>, transform_indices = @transform_3, window_bounds = array<i64: 96, 36>}, {pipeline_mode = #tpu.pipeline_mode<synchronous>, transform_indices = @transform_4, window_bounds = array<i64: 1, 512>}, {pipeline_mode = #tpu.pipeline_mode<synchronous>, transform_indices = @transform_5, window_bounds = array<i64: 1, 512>}, {transform_indices = @transform_6, window_bounds = array<i64: 1, 128>}]} {
    %c0 = arith.constant 0 : index
    %c0_0 = arith.constant 0 : index
    %0 = vector.load %arg1[%c0, %c0_0] : memref<16x96xf32, #tpu.memory_space<vmem>>, vector<16x96xf32>
    %c0_1 = arith.constant 0 : index
    %c0_2 = arith.constant 0 : index
    %1 = vector.load %arg2[%c0_1, %c0_2] : memref<16x96xf32, #tpu.memory_space<vmem>>, vector<16x96xf32>
    %2 = arith.mulf %0, %0 : vector<16x96xf32>
    %3 = arith.mulf %1, %1 : vector<16x96xf32>
    %4 = arith.mulf %0, %1 : vector<16x96xf32>
    %5 = tpu.concatenate %0, %1, %2, %3, %4 in 0 : vector<16x96xf32>, vector<16x96xf32>, vector<16x96xf32>, vector<16x96xf32>, vector<16x96xf32> -> vector<80x96xf32>
    %c0_3 = arith.constant 0 : index
    %c0_4 = arith.constant 0 : index
    %6 = vector.load %arg3[%c0_3, %c0_4] : memref<40x80xf32, #tpu.memory_space<vmem>>, vector<40x80xf32>
    %cst = arith.constant dense<0.000000e+00> : vector<40x96xf32>
    %7 = tpu.matmul %6, %5, %cst {dimension_numbers = #tpu.dot_dimension_numbers<[1], [0], [0], [1], [0, 0, 1, 1], [], []>} : vector<40x80xf32>, vector<80x96xf32>, vector<40x96xf32> -> vector<40x96xf32>
    %c0_5 = arith.constant 0 : index
    %c0_6 = arith.constant 0 : index
    %8 = vector.load %arg4[%c0_5, %c0_6] : memref<96x36xf32, #tpu.memory_space<vmem>>, vector<96x36xf32>
    %cst_7 = arith.constant dense<0.000000e+00> : vector<40x36xf32>
    %9 = tpu.matmul %7, %8, %cst_7 {dimension_numbers = #tpu.dot_dimension_numbers<[1], [0], [0], [1], [0, 0, 1, 1], [], []>} : vector<40x96xf32>, vector<96x36xf32>, vector<40x36xf32> -> vector<40x36xf32>
    %10 = vector.extract_strided_slice %9 {offsets = [0, 0], sizes = [6, 36], strides = [1, 1]} : vector<40x36xf32> to vector<6x36xf32>
    %11 = vector.extract_strided_slice %9 {offsets = [8, 0], sizes = [6, 36], strides = [1, 1]} : vector<40x36xf32> to vector<6x36xf32>
    %12 = vector.extract_strided_slice %9 {offsets = [16, 0], sizes = [6, 36], strides = [1, 1]} : vector<40x36xf32> to vector<6x36xf32>
    %13 = vector.extract_strided_slice %9 {offsets = [24, 0], sizes = [6, 36], strides = [1, 1]} : vector<40x36xf32> to vector<6x36xf32>
    %14 = vector.extract_strided_slice %9 {offsets = [32, 0], sizes = [6, 36], strides = [1, 1]} : vector<40x36xf32> to vector<6x36xf32>
    %15 = arith.mulf %10, %10 : vector<6x36xf32>
    %16 = arith.mulf %11, %11 : vector<6x36xf32>
    %17 = arith.mulf %10, %11 : vector<6x36xf32>
    %18 = arith.subf %12, %15 : vector<6x36xf32>
    %19 = arith.subf %13, %16 : vector<6x36xf32>
    %20 = arith.subf %14, %17 : vector<6x36xf32>
    %cst_8 = arith.constant 2.000000e+00 : f32
    %21 = vector.broadcast %cst_8 : f32 to vector<6x36xf32>
    %22 = arith.mulf %21, %17 : vector<6x36xf32>
    %cst_9 = arith.constant 9.99999974E-5 : f32
    %23 = vector.broadcast %cst_9 : f32 to vector<6x36xf32>
    %24 = arith.addf %22, %23 : vector<6x36xf32>
    %cst_10 = arith.constant 2.000000e+00 : f32
    %25 = vector.broadcast %cst_10 : f32 to vector<6x36xf32>
    %26 = arith.mulf %25, %20 : vector<6x36xf32>
    %cst_11 = arith.constant 8.99999984E-4 : f32
    %27 = vector.broadcast %cst_11 : f32 to vector<6x36xf32>
    %28 = arith.addf %26, %27 : vector<6x36xf32>
    %29 = arith.mulf %24, %28 : vector<6x36xf32>
    %30 = arith.addf %15, %16 : vector<6x36xf32>
    %cst_12 = arith.constant 9.99999974E-5 : f32
    %31 = vector.broadcast %cst_12 : f32 to vector<6x36xf32>
    %32 = arith.addf %30, %31 : vector<6x36xf32>
    %33 = arith.addf %18, %19 : vector<6x36xf32>
    %cst_13 = arith.constant 8.99999984E-4 : f32
    %34 = vector.broadcast %cst_13 : f32 to vector<6x36xf32>
    %35 = arith.addf %33, %34 : vector<6x36xf32>
    %36 = arith.mulf %32, %35 : vector<6x36xf32>
    %37 = arith.divf %29, %36 : vector<6x36xf32>
    %38 = vector.shape_cast %37 : vector<6x36xf32> to vector<1x6x36xf32>
    %cst_14 = arith.constant dense<0.000000e+00> : vector<1xf32>
    %39 = vector.multi_reduction <add>, %38, %cst_14 [1, 2] : vector<1x6x36xf32> to vector<1xf32>
    %40 = vector.shape_cast %39 : vector<1xf32> to vector<1x1x1xf32>
    %41 = vector.extract %40[0, 0, 0] : f32 from vector<1x1x1xf32>
    %c0_15 = arith.constant 0 : index
    %c0_16 = arith.constant 0 : index
    %42 = vector.load %arg5[%c0_15, %c0_16] : memref<1x512xf32, #tpu.memory_space<vmem>>, vector<1x512xf32>
    %c0_17 = arith.constant 0 : index
    %c0_18 = arith.constant 0 : index
    %43 = vector.load %arg6[%c0_17, %c0_18] : memref<1x512xf32, #tpu.memory_space<vmem>>, vector<1x512xf32>
    %44 = arith.mulf %42, %43 : vector<1x512xf32>
    %45 = vector.shape_cast %44 : vector<1x512xf32> to vector<1x1x512xf32>
    %cst_19 = arith.constant dense<0.000000e+00> : vector<1xf32>
    %46 = vector.multi_reduction <add>, %45, %cst_19 [1, 2] : vector<1x1x512xf32> to vector<1xf32>
    %47 = vector.shape_cast %46 : vector<1xf32> to vector<1x1x1xf32>
    %48 = vector.extract %47[0, 0, 0] : f32 from vector<1x1x1xf32>
    %49 = arith.mulf %42, %42 : vector<1x512xf32>
    %50 = vector.shape_cast %49 : vector<1x512xf32> to vector<1x1x512xf32>
    %cst_20 = arith.constant dense<0.000000e+00> : vector<1xf32>
    %51 = vector.multi_reduction <add>, %50, %cst_20 [1, 2] : vector<1x1x512xf32> to vector<1xf32>
    %52 = vector.shape_cast %51 : vector<1xf32> to vector<1x1x1xf32>
    %53 = vector.extract %52[0, 0, 0] : f32 from vector<1x1x1xf32>
    %54 = math.sqrt %53 : f32
    %55 = arith.mulf %43, %43 : vector<1x512xf32>
    %56 = vector.shape_cast %55 : vector<1x512xf32> to vector<1x1x512xf32>
    %cst_21 = arith.constant dense<0.000000e+00> : vector<1xf32>
    %57 = vector.multi_reduction <add>, %56, %cst_21 [1, 2] : vector<1x1x512xf32> to vector<1xf32>
    %58 = vector.shape_cast %57 : vector<1xf32> to vector<1x1x1xf32>
    %59 = vector.extract %58[0, 0, 0] : f32 from vector<1x1x1xf32>
    %60 = math.sqrt %59 : f32
    %61 = arith.mulf %54, %60 : f32
    %cst_22 = arith.constant 9.99999993E-9 : f32
    %62 = arith.maximumf %61, %cst_22 : f32
    %63 = arith.divf %48, %62 : f32
    %cst_23 = arith.constant 1.000000e+00 : f32
    %64 = arith.addf %63, %cst_23 : f32
    %cst_24 = arith.constant 5.000000e-01 : f32
    %65 = arith.mulf %64, %cst_24 : f32
    %cst_25 = arith.constant 1.000000e+00 : f32
    %66 = arith.subf %cst_25, %65 : f32
    %67 = arith.mulf %66, %66 : f32
    %cst_26 = arith.constant 1.000000e+01 : f32
    %68 = arith.mulf %67, %cst_26 : f32
    %69 = tpu.iota {dimensions = array<i32: 1>} : vector<1x128xi32>
    %c0_i32 = arith.constant 0 : i32
    %70 = vector.broadcast %c0_i32 : i32 to vector<1x128xi32>
    %71 = arith.cmpi eq, %69, %70 : vector<1x128xi32>
    %c1_i32 = arith.constant 1 : i32
    %72 = vector.broadcast %c1_i32 : i32 to vector<1x128xi32>
    %73 = arith.cmpi eq, %69, %72 : vector<1x128xi32>
    %cst_27 = arith.constant 0.000000e+00 : f32
    %74 = vector.broadcast %68 : f32 to vector<1x128xf32>
    %75 = vector.broadcast %cst_27 : f32 to vector<1x128xf32>
    %76 = arith.select %73, %74, %75 : vector<1x128xi1>, vector<1x128xf32>
    %77 = vector.broadcast %41 : f32 to vector<1x128xf32>
    %78 = arith.select %71, %77, %76 : vector<1x128xi1>, vector<1x128xf32>
    %c0_28 = arith.constant 0 : index
    %c0_29 = arith.constant 0 : index
    %79 = vector.load %arg7[%c0_28, %c0_29] : memref<1x128xf32, #tpu.memory_space<vmem>>, vector<1x128xf32>
    tpu.vector_store %arg7[%c0_28, %c0_29], %78 {strides = array<i32>} : memref<1x128xf32, #tpu.memory_space<vmem>>, vector<1x128xf32>,
    return
  }
  func.func @transform_0(%arg0: i32) -> (i32, i32) {
    %c0_i32 = arith.constant 0 : i32
    %c0_i32_0 = arith.constant 0 : i32
    return %c0_i32, %arg0 : i32, i32
  }
  func.func @transform_1(%arg0: i32) -> (i32, i32) {
    %c0_i32 = arith.constant 0 : i32
    %c0_i32_0 = arith.constant 0 : i32
    return %c0_i32, %arg0 : i32, i32
  }
  func.func @transform_2(%arg0: i32) -> (i32, i32) {
    %c0_i32 = arith.constant 0 : i32
    %c0_i32_0 = arith.constant 0 : i32
    %c0_i32_1 = arith.constant 0 : i32
    return %c0_i32, %c0_i32_0 : i32, i32
  }
  func.func @transform_3(%arg0: i32) -> (i32, i32) {
    %c0_i32 = arith.constant 0 : i32
    %c0_i32_0 = arith.constant 0 : i32
    %c0_i32_1 = arith.constant 0 : i32
    return %c0_i32, %c0_i32_0 : i32, i32
  }
  func.func @transform_4(%arg0: i32) -> (i32, i32) {
    %c0_i32 = arith.constant 0 : i32
    %c0_i32_0 = arith.constant 0 : i32
    %c0_i32_1 = arith.constant 0 : i32
    return %c0_i32, %c0_i32_0 : i32, i32
  }
  func.func @transform_5(%arg0: i32) -> (i32, i32) {
    %c0_i32 = arith.constant 0 : i32
    %c0_i32_0 = arith.constant 0 : i32
    %c0_i32_1 = arith.constant 0 : i32
    return %c0_i32, %c0_i32_0 : i32, i32
  }
  func.func @transform_6(%arg0: i32) -> (i32, i32) {
    %c0_i32 = arith.constant 0 : i32
    %c0_i32_0 = arith.constant 0 : i32
    return %arg0, %c0_i32 : i32, i32
  }
}

</mosaic_0001>

<bundles_post_ra>
// kernel: tpu_custom_call.1
= control target key start
LH: loop header
LB: loop body
LE: loop exit
PB: predicated region body
PF: predicated region fallthrough
CT: control target
= control target key end

     0   :  { %v625_v3 = vmov 0.0   ;;  %vm626_vm0 = vmmov 0   ;;  %s808_s0 = inlined_call_operand.vmem [shape: f32[16,96], index: 0, kind: input, shape index: {}]   ;;  %s809_s1 = inlined_call_operand.vmem [shape: f32[16,96], index: 1, kind: input, shape index: {}]   ;;  %s810_s2 = inlined_call_operand.vmem [shape: f32[40,80], index: 2, kind: input, shape index: {}]   ;;  %s811_s3 = inlined_call_operand.vmem [shape: f32[96,36], index: 3, kind: input, shape index: {}]   ;;  %s812_s4 = inlined_call_operand.vmem [shape: f32[1,512], index: 4, kind: input, shape index: {}]   ;;  %s813_s5 = inlined_call_operand.vmem [shape: f32[1,512], index: 5, kind: input, shape index: {}]   ;;  %s814_s6 = inlined_call_operand.hbm [shape: f32[1,128], index: 6, kind: output, shape index: {}]  }
   0x1   :  { %v25_v0 = vld [vmem:[%s808_s0 + $0x8] sm:$0xff]  ;;  %v24_v2 = vld [vmem:[%s808_s0] sm:$0xff]  ;;  %503 = vmatprep.subr.mxu0 %v625_v3  ;;  %523 = vmatprep.mubr.msk.f32.mxu0 %vm626_vm0, %v625_v3  ;;  %v156_v8 = vld [vmem:[%s811_s3 + $0x58] sm:$0xff] }
   0x2   :  { %v27_v1 = vld [vmem:[%s809_s1 + $0x8] sm:$0xff]  ;;  %v26_v5 = vld [vmem:[%s809_s1] sm:$0xff]  ;;  %538 = vmatprep.subr.mxu1 %v625_v3  ;;  %v155_v9 = vld [vmem:[%s811_s3 + $0x50] sm:$0xff]  ;;  %562 = vmatprep.mubr.msk.f32.mxu1 %vm626_vm0, %v625_v3 }
   0x3   :  { %v33_v4 = vmul.f32 %v27_v1, %v25_v0  ;;  %v32_v6 = vmul.f32 %v26_v5, %v24_v2  ;;  %v31_v7 = vmul.f32 %v27_v1, %v27_v1  ;;  %539 = vmatpush3.msra.mxu1 %v156_v8  ;;  %v30_v10 = vmul.f32 %v26_v5, %v26_v5  ;;  %v154_v11 = vld [vmem:[%s811_s3 + $0x48] sm:$0xff] }
   0x4   :  { %540 = vmatprep.subr.mxu1 %v625_v3 }
   0x5   :  { %504 = vmatpush3.msra.mxu0 %v33_v4  ;;  %541 = vmatpush3.msra.mxu1 %v155_v9 }
   0x6   :  { %505 = vmatprep.subr.mxu0 %v625_v3 }
   0x7   :  { %506 = vmatpush3.msra.mxu0 %v32_v6 }
   0x8   :  { %507 = vmatprep.subr.mxu0 %v625_v3 }
   0x9   :  { %11 = vsyncpa [#allocation3], 0  ;;  %508 = vmatpush3.msra.mxu0 %v31_v7  ;;  %v29_v12 = vmul.f32 %v25_v0, %v25_v0  ;;  %542 = vmatprep.subr.mxu1 %v625_v3  ;;  %v153_v13 = vld [vmem:[%s811_s3 + $0x40] sm:$0xff]  ;;  %v28_v14 = vmul.f32 %v24_v2, %v24_v2  ;;  %v152_v15 = vld [vmem:[%s811_s3 + $0x38] sm:$0xff]  ;;  %vm39_vm1 = vcmask 654336   ;;  %vm157_vm2 = vcmask 785408  }
   0xa   :  { %509 = vmatprep.subr.mxu0 %v625_v3  ;;  %543 = vmatpush3.msra.mxu1 %v154_v11  ;;  %v151_v16 = vld [vmem:[%s811_s3 + $0x30] sm:$0xff]  ;;  %v150_v17 = vld [vmem:[%s811_s3 + $0x28] sm:$0xff]  ;;  %v149_v18 = vld [vmem:[%s811_s3 + $0x20] sm:$0xff]  ;;  %v296_v38 = vlaneseq  ;;  %vm316_vm3 = vcmask 1040384   ;;  %vm281_vm4 = vcmask 291840   ;;  %s628_s27 = smov [#allocation2]  }
   0xb   :  { %510 = vmatpush3.msra.mxu0 %v30_v10  ;;  %544 = vmatprep.subr.mxu1 %v625_v3  ;;  %v148_v19 = vld [vmem:[%s811_s3 + $0x18] sm:$0xff]  ;;  %v34_v20 = vld [vmem:[%s810_s2] sm:$0xff]  ;;  %v147_v21 = vld [vmem:[%s811_s3 + $0x10] sm:$0xff]  ;;  %s627_s18 = smov 1e-08   ;;  %s453_s28 = sshll.u32 %s628_s27, 4  ;;  %s454_s28 = int_to_ptr.vmem [resolvable:$true] %s453_s28 }
   0xc   :  { %511 = vmatprep.subr.mxu0 %v625_v3  ;;  %545 = vmatpush3.msra.mxu1 %v153_v13  ;;  %v146_v22 = vld [vmem:[%s811_s3 + $0x8] sm:$0xff]  ;;  %v36_v24 = vld [vmem:[%s810_s2 + $0x10] sm:$0xff]  ;;  %v37_v25 = vld [vmem:[%s810_s2 + $0x18] sm:$0xff]  ;;  %v297_v40 = vshrl.u32 %v296_v38, 7  ;;  %s603_s29 = scalar_lea.vmem %s454_s28, 16  ;;  %s607_s30 = scalar_lea.vmem %s454_s28, 32 }
   0xd   :  { %512 = vmatpush3.msra.mxu0 %v29_v12  ;;  %546 = vmatprep.subr.mxu1 %v625_v3  ;;  %v35_v23 = vld [vmem:[%s810_s2 + $0x8] sm:$0xff]  ;;  %v38_v26 = vld [vmem:[%s810_s2 + $0x20] sm:$0xff]  ;;  %p604_p0 = scmp.ne.s32.totalorder %s454_s28, %s603_s29  ;;  %p608_p1 = scmp.lt.s32.totalorder %s454_s28, %s454_s28 }
   0xe   :  { %513 = vmatprep.subr.mxu0 %v625_v3  ;;  %547 = vmatpush3.msra.mxu1 %v152_v15  ;;  %v145_v27 = vld [vmem:[%s811_s3] sm:$0xff]  ;;  %v298_v42 = vsub.s32 0, %v297_v40  ;;  %v302_v43 = vsub.s32 1, %v297_v40  ;;  %v306_v44 = vsub.s32 2, %v297_v40  ;;  %v310_v45 = vsub.s32 3, %v297_v40  ;;  %p609_p2 = scmp.lt.s32.totalorder %s607_s30, %s603_s29 }
   0xf   :  { %514 = vmatpush3.msra.mxu0 %v28_v14  ;;  %548 = vmatprep.subr.mxu1 %v625_v3  ;;  %v292_v39 = vld [vmem:[%s812_s4] sm:$0xf] }
  0x10   :  { %515 = vmatprep.subr.mxu0 %v625_v3  ;;  %549 = vmatpush3.msra.mxu1 %v151_v16  ;;  %v333_v41 = vmul.f32 %v292_v39, %v292_v39  ;;  %v293_v54 = vld [vmem:[%s813_s5] sm:$0xf]  ;;  %p610_p3 = por %p609_p2, %p608_p1 }
  0x11   :  { %516 = vmatpush3.msra.mxu0 %v27_v1  ;;  %550 = vmatprep.subr.mxu1 %v625_v3  ;;  %v294_v56 = vmul.f32 %v293_v54, %v292_v39  ;;  %v380_v6 = vmul.f32 %v293_v54, %v293_v54 }
  0x12   :  { %517 = vmatprep.subr.mxu0 %v625_v3  ;;  %551 = vmatpush3.msra.mxu1 %v150_v17  ;;  %v338_v46 = vrot.slane %v333_v41, %v298_v42  ;;  %v342_v47 = vrot.slane %v333_v41, %v302_v43  ;;  %v346_v48 = vrot.slane %v333_v41, %v306_v44  ;;  %p611_p4 = pnand %p610_p3, %p604_p0 }
  0x13   :  { %518 = vmatpush3.msra.mxu0 %v26_v5  ;;  %552 = vmatprep.subr.mxu1 %v625_v3  ;;  %v350_v49 = vrot.slane %v333_v41, %v310_v45  ;;  %v299_v58 = vrot.slane %v294_v56, %v298_v42  ;;  %v303_v59 = vrot.slane %v294_v56, %v302_v43 }
  0x14   :  { %519 = vmatprep.subr.mxu0 %v625_v3  ;;  %553 = vmatpush3.msra.mxu1 %v149_v18  ;;  %v355_v50 = vsel %vm316_vm3, %v338_v46, 0.0  ;;  %v356_v51 = vsel %vm316_vm3, %v342_v47, 0.0  ;;  %v358_v52 = vsel %vm316_vm3, %v346_v48, 0.0  ;;  %v307_v61 = vrot.slane %v294_v56, %v306_v44 }
  0x15   :  { %520 = vmatpush3.msra.mxu0 %v25_v0  ;;  %554 = vmatprep.subr.mxu1 %v625_v3  ;;  %v357_v53 = vadd.f32 %v356_v51, %v355_v50  ;;  %v360_v55 = vsel %vm316_vm3, %v350_v49, 0.0  ;;  %v317_v62 = vsel %vm316_vm3, %v299_v58, 0.0  ;;  %v318_v63 = vsel %vm316_vm3, %v303_v59, 0.0 }
  0x16   :  { %521 = vmatprep.subr.mxu0 %v625_v3  ;;  %555 = vmatpush3.msra.mxu1 %v148_v19  ;;  %v319_v0 = vadd.f32 %v318_v63, %v317_v62  ;;  %v311_v1 = vrot.slane %v294_v56, %v310_v45  ;;  %v385_v7 = vrot.slane %v380_v6, %v298_v42 }
  0x17   :  { %522 = vmatpush3.msra.mxu0 %v24_v2  ;;  %556 = vmatprep.subr.mxu1 %v625_v3  ;;  %v359_v57 = vadd.f32 %v358_v52, %v357_v53  ;;  %v320_v2 = vsel %vm316_vm3, %v307_v61, 0.0  ;;  %v389_v8 = vrot.slane %v380_v6, %v302_v43  ;;  %v393_v9 = vrot.slane %v380_v6, %v306_v44 }
  0x18   :  { %524 = vmatmul.mubr.msk.f32.vlgmr.msra.gmra.mxu0 %vm39_vm1, %v34_v20  ;;  %557 = vmatpush3.msra.mxu1 %v147_v21  ;;  %v322_v4 = vsel %vm316_vm3, %v311_v1, 0.0  ;;  %v397_v10 = vrot.slane %v380_v6, %v310_v45  ;;  %v402_v11 = vsel %vm316_vm3, %v385_v7, 0.0 }
  0x19   :  { %526 = vmatprep.mubr.msk.f32.mxu0 %vm626_vm0, %v625_v3  ;;  %558 = vmatprep.subr.mxu1 %v625_v3  ;;  %v361_v60 = vadd.f32 %v360_v55, %v359_v57  ;;  %v403_v12 = vsel %vm316_vm3, %v389_v8, 0.0  ;;  %v405_v13 = vsel %vm316_vm3, %v393_v9, 0.0 }
  0x1a   :  { %559 = vmatpush3.msra.mxu1 %v146_v22  ;;  %v404_v14 = vadd.f32 %v403_v12, %v402_v11  ;;  %v407_v15 = vsel %vm316_vm3, %v397_v10, 0.0 }
  0x1b   :  { %560 = vmatprep.subr.mxu1 %v625_v3  ;;  %362 = vadd.xlane.f32.xlu1 %v361_v60 }
  0x1c   :  { %527 = vmatmul.mubr.msk.f32.gmra.mxu0 %vm39_vm1, %v35_v23  ;;  %561 = vmatpush3.msra.mxu1 %v145_v27  ;;  %v406_v16 = vadd.f32 %v405_v13, %v404_v14 }
  0x1d   :  { %529 = vmatprep.mubr.msk.f32.mxu0 %vm626_vm0, %v625_v3 }
  0x1e   :  { %v408_v17 = vadd.f32 %v407_v15, %v406_v16 }
  0x20   :  { %530 = vmatmul.mubr.msk.f32.gmra.mxu0 %vm39_vm1, %v36_v24  ;;  %409 = vadd.xlane.f32.xlu1 %v408_v17 }
  0x21   :  { %532 = vmatprep.mubr.msk.f32.mxu0 %vm626_vm0, %v625_v3 }
  0x24   :  { %533 = vmatmul.mubr.msk.f32.gmra.mxu0 %vm39_vm1, %v37_v25 }
  0x25   :  { %535 = vmatprep.mubr.msk.f32.mxu0 %vm626_vm0, %v625_v3 }
  0x28   :  { %536 = vmatmul.mubr.msk.f32.gmra.mxu0 %vm39_vm1, %v38_v26 }
  0xa4   :  { %v363_v48 = vpop.xlane.xlu1 %362 }
  0xa5   :  { %v364_v49 = vrot.slane %v363_v48, 4 }
  0xa7   :  { %v365_v50 = vadd.f32 %v364_v49, %v363_v48 }
  0xa9   :  { %v366_v54 = vrot.slane %v365_v50, 2 }
  0xab   :  { %v367_v60 = vadd.f32 %v366_v54, %v365_v50 }
  0xad   :  { %v368_v1 = vrot.slane %v367_v60, 1 }
  0xd8   :  { %v121_v28 = vpop.f32.mrf.mxu0 }
  0xd9   :  { %563 = vmatmul.mubr.msk.f32.vlgmr.msra.gmra.mxu1 %vm157_vm2, %v121_v28 }
  0xda   :  { %v525_v29 = vpop.f32.mrf.mxu0  ;;  %565 = vmatprep.mubr.msk.f32.mxu1 %vm626_vm0, %v625_v3 }
  0xdc   :  { %v126_v30 = vpop.f32.mrf.mxu0 }
  0xdd   :  { %566 = vmatmul.mubr.msk.f32.gmra.mxu1 %vm157_vm2, %v126_v30 }
  0xde   :  { %v528_v31 = vpop.f32.mrf.mxu0  ;;  %568 = vmatprep.mubr.msk.f32.mxu1 %vm626_vm0, %v625_v3 }
  0xe0   :  { %v131_v32 = vpop.f32.mrf.mxu0 }
  0xe1   :  { %569 = vmatmul.mubr.msk.f32.gmra.mxu1 %vm157_vm2, %v131_v32 }
  0xe2   :  { %v531_v33 = vpop.f32.mrf.mxu0  ;;  %571 = vmatprep.mubr.msk.f32.mxu1 %vm626_vm0, %v625_v3 }
  0xe4   :  { %v136_v34 = vpop.f32.mrf.mxu0 }
  0xe5   :  { %572 = vmatmul.mubr.msk.f32.gmra.mxu1 %vm157_vm2, %v136_v34 }
  0xe6   :  { %v534_v35 = vpop.f32.mrf.mxu0  ;;  %574 = vmatprep.mubr.msk.f32.mxu1 %vm626_vm0, %v625_v3  ;;  %v321_v3 = vadd.f32 %v320_v2, %v319_v0 }
  0xe8   :  { %v141_v36 = vpop.f32.mrf.mxu0  ;;  %v323_v5 = vadd.f32 %v322_v4, %v321_v3  ;;  %v369_v4 = vadd.f32 %v368_v1, %v367_v60 }
  0xe9   :  { %575 = vmatmul.mubr.msk.f32.gmra.mxu1 %vm157_vm2, %v141_v36 }
  0xea   :  { %v537_v37 = vpop.f32.mrf.mxu0 }
 0x199   :  { %v239_v18 = vpop.f32.mrf.mxu1 }
 0x19a   :  { %v263_v25 = vmul.f32 %v239_v18, %v239_v18 }
 0x19b   :  { %v564_v19 = vpop.f32.mrf.mxu1 }
 0x19d   :  { %v244_v20 = vpop.f32.mrf.mxu1 }
 0x19e   :  { %v264_v23 = vmul.f32 %v244_v20, %v244_v20  ;;  %v265_v36 = vmul.f32 %v244_v20, %v239_v18 }
 0x19f   :  { %v567_v21 = vpop.f32.mrf.mxu1 }
 0x1a0   :  { %v274_v27 = vadd.f32 %v264_v23, %v263_v25  ;;  %v269_v41 = vmul.f32 2.0, %v265_v36 }
 0x1a1   :  { %v249_v22 = vpop.f32.mrf.mxu1 }
 0x1a2   :  { %v266_v28 = vsub.f32 %v249_v22, %v263_v25  ;;  %v275_v33 = vadd.f32 0.0001, %v274_v27  ;;  %v270_v43 = vadd.f32 0.0001, %v269_v41 }
 0x1a3   :  { %v570_v24 = vpop.f32.mrf.mxu1 }
 0x1a5   :  { %v254_v26 = vpop.f32.mrf.mxu1 }
 0x1a6   :  { %v267_v29 = vsub.f32 %v254_v26, %v264_v23  ;;  %v439_v26 = vand.u32 127, %v296_v38 }
 0x1a7   :  { %v573_v30 = vpop.f32.mrf.mxu1 }
 0x1a8   :  { %v276_v31 = vadd.f32 %v267_v29, %v266_v28  ;;  %vm441_vm9 = vcmp.eq.s32.totalorder %v439_v26, 1  ;;  %vm440_vm10 = vcmp.eq.s32.totalorder %v439_v26, 0 }
 0x1a9   :  { %v259_v32 = vpop.f32.mrf.mxu1 }
 0x1aa   :  { %v277_v34 = vadd.f32 0.0009, %v276_v31  ;;  %v268_v39 = vsub.f32 %v259_v32, %v265_v36 }
 0x1ab   :  { %v576_v35 = vpop.f32.mrf.mxu1 }
 0x1ac   :  { %v278_v37 = vmul.f32 %v277_v34, %v275_v33  ;;  %v271_v40 = vmul.f32 2.0, %v268_v39 }
 0x1ae   :  { %595 = vrcp.f32 %v278_v37  ;;  %v272_v42 = vadd.f32 0.0009, %v271_v40 }
 0x1b0   :  { %v273_v44 = vmul.f32 %v272_v42, %v270_v43 }
 0x1bb   :  { %v596_v45 = vpop.eup %595 }
 0x1bc   :  { %v280_v46 = vmul.f32 %v596_v45, %v273_v44 }
 0x1be   :  { %v282_v47 = vsel %vm281_vm4, %v280_v46, 0.0 }
 0x1bf   :  { %283 = vadd.xlane.f32.xlu0 %v282_v47 }
 0x1c3   :  { %324 = vadd.xlane.f32.xlu0 %v323_v5  ;;  %v410_v5 = vpop.xlane.xlu1 %409 }
 0x1c4   :  { %v411_v6 = vrot.slane %v410_v5, 4 }
 0x1c6   :  { %v412_v8 = vadd.f32 %v411_v6, %v410_v5 }
 0x1c8   :  { %v413_v9 = vrot.slane %v412_v8, 2 }
 0x1ca   :  { %v414_v10 = vadd.f32 %v413_v9, %v412_v8 }
 0x1cc   :  { %v415_v12 = vrot.slane %v414_v10, 1 }
 0x1ce   :  { %v416_v17 = vadd.f32 %v415_v12, %v414_v10 }
 0x248   :  { %v284_v51 = vpop.xlane.xlu0 %283 }
 0x249   :  { %v285_v52 = vrot.slane %v284_v51, 4 }
 0x24b   :  { %v286_v53 = vadd.f32 %v285_v52, %v284_v51 }
 0x24c   :  { %v325_v55 = vpop.xlane.xlu0 %324 }
 0x24d   :  { %v287_v56 = vrot.slane %v286_v53, 2  ;;  %v326_v57 = vrot.slane %v325_v55, 4 }
 0x24f   :  { %v327_v58 = vadd.f32 %v326_v57, %v325_v55  ;;  %v288_v59 = vadd.f32 %v287_v56, %v286_v53 }
 0x251   :  { %v328_v61 = vrot.slane %v327_v58, 2  ;;  %v289_v62 = vrot.slane %v288_v59, 1 }
 0x253   :  { %v329_v63 = vadd.f32 %v328_v61, %v327_v58  ;;  %v290_v0 = vadd.f32 %v289_v62, %v288_v59 }
 0x255   :  { %577 = vpush %v290_v0  ;;  %v330_v2 = vrot.slane %v329_v63, 1 }
 0x257   :  { %v331_v3 = vadd.f32 %v330_v2, %v329_v63 }
 0x259   :  { %579 = vpush %v331_v3 }
 0x25a   :  { %581 = vpush %v369_v4 }
 0x286   :  { %s798_s5 = spop %577 }
 0x287   :  { %v444_v28 = vstv %s798_s5 }
 0x28a   :  { %s800_s12 = spop %579 }
 0x28b   :  { %s582_s13 = spop %581 }
 0x28c   :  { %v371_v7 = vstv %s582_s13 }
 0x28d   :  { %597 = vrsqrt.f32 %v371_v7  ;;  %vm374_vm5 = vcmp.eq.f32.partialorder %v371_v7, inf  ;;  %v377_v14 = vand.u32 2147483648, %v371_v7  ;;  %vm376_vm6 = vcmp.eq.f32.partialorder %v371_v7, 0.0 }
 0x29a   :  { %v598_v11 = vpop.eup %597 }
 0x29b   :  { %v373_v13 = vmul.f32 %v598_v11, %v371_v7 }
 0x29d   :  { %v375_v15 = vsel %vm374_vm5, %v371_v7, %v373_v13 }
 0x29e   :  { %v378_v16 = vsel %vm376_vm6, %v377_v14, %v375_v15 }
 0x29f   :  { %583 = vpush %v378_v16 }
 0x2a0   :  { %585 = vpush %v416_v17 }
 0x2d0   :  { %s584_s14 = spop %583 }
 0x2d1   :  { %s586_s15 = spop %585 }
 0x2d2   :  { %v418_v18 = vstv %s586_s15 }
 0x2d3   :  { %599 = vrsqrt.f32 %v418_v18  ;;  %vm421_vm7 = vcmp.eq.f32.partialorder %v418_v18, inf  ;;  %v424_v21 = vand.u32 2147483648, %v418_v18  ;;  %vm423_vm8 = vcmp.eq.f32.partialorder %v418_v18, 0.0 }
 0x2e0   :  { %v600_v19 = vpop.eup %599 }
 0x2e1   :  { %v420_v20 = vmul.f32 %v600_v19, %v418_v18 }
 0x2e3   :  { %v422_v22 = vsel %vm421_vm7, %v418_v18, %v420_v20 }
 0x2e4   :  { %v425_v23 = vsel %vm423_vm8, %v424_v21, %v422_v22 }
 0x2e5   :  { %587 = vpush %v425_v23 }
 0x316   :  { %s588_s16 = spop %587 }
 0x317   :  { %s427_s17 = smul.f32 %s588_s16, %s584_s14 }
 0x319   :  { %s428_s19 = smax.f32 %s627_s18, %s427_s17 }
 0x31a   :  { %v429_v24 = vstv %s428_s19 }
 0x31b   :  { %601 = vrcp.f32 %v429_v24 }
 0x328   :  { %v602_v25 = vpop.eup %601 }
 0x329   :  { %589 = vpush %v602_v25 }
 0x35a   :  { %s590_s20 = spop %589 }
 0x35b   :  { %s432_s21 = smul.f32 %s590_s20, %s800_s12 }
 0x35d   :  { %s433_s22 = sadd.f32 1.0, %s432_s21 }
 0x35f   :  { %s434_s23 = smul.f32 0.5, %s433_s22 }
 0x361   :  { %s435_s24 = ssub.f32 1.0, %s434_s23 }
 0x363   :  { %s436_s25 = smul.f32 %s435_s24, %s435_s24 }
 0x365   :  { %s437_s26 = smul.f32 10.0, %s436_s25 }
 0x367   :  { %v442_v27 = vstv %s437_s26 }
 0x368   :  { %v443_v29 = vsel %vm441_vm9, %v442_v27, 0.0 }
 0x369   :  { %v445_v30 = vsel %vm440_vm10, %v444_v28, %v443_v29 }
 0x36a   :  { %446 = vst [vmem:[#allocation2] sm:$0x1] %v445_v30 }
 0x36b   :  { %614 = shalt.err (!%p611_p4)
}
 0x36c   :  { %456 = dma.vmem_to_hbm [thread:$0]  %s454_s28, 16, %s814_s6, [#allocation3]  }
 0x36d   :  { %623 = dma.done.wait [#allocation3], 16  }
 0x36e   :  { %624 = vsyncadd [#allocation3], 4294967280 }
 0x36f   :  { %460 = vsyncpa [#allocation3], 1 }

</bundles_post_ra>
